<compile_context>
chip_gen: v7x
topology: tpu7x:2x2x1
jax: 0.10.0
libtpu: 0.0.40
codegen_flags: <defaults>
</compile_context>

<pallas_src>
import math

import numpy as np
import jax
import jax.numpy as jnp
from jax.experimental import pallas as pl
from jax.experimental.pallas import tpu as pltpu

_LANE = 128
_SUBLANE = 8
# ~2 MiB per block: in+out double-buffered => ~8 MiB VMEM, safe under the
# default scoped-VMEM limit on every generation (16 MiB v5e, 32 MiB v6e/v7x).
_TARGET_BLOCK_BYTES = 2 * 1024 * 1024


def _copy_kernel(x_ref, o_ref):
    # Pure pass-through of the current lane-dense tile (full unmasked vst).
    o_ref[...] = x_ref[...]


def _choose_block_rows(rows: int, itemsize: int) -> int:
    """Largest row tile that divides `rows`, is sublane-aligned, and stays
    under ~_TARGET_BLOCK_BYTES per block."""
    cap_rows = max(_SUBLANE, _TARGET_BLOCK_BYTES // (_LANE * itemsize))
    cap_rows = (cap_rows // _SUBLANE) * _SUBLANE
    if rows <= cap_rows:
        # Single/short grid: block equals (or is) the full row extent.
        return rows
    # `rows` is a multiple of _SUBLANE here; find the largest sublane-aligned
    # divisor not exceeding the cap (trace-time Python, cheap).
    for br in range(cap_rows, _SUBLANE - 1, -_SUBLANE):
        if rows % br == 0:
            return br
    return _SUBLANE


def _identity_pallas_2d(x2d: jax.Array) -> jax.Array:
    rows, lanes = x2d.shape
    block_rows = _choose_block_rows(rows, x2d.dtype.itemsize)
    grid = (rows // block_rows,)
    return pl.pallas_call(
        _copy_kernel,
        out_shape=jax.ShapeDtypeStruct((rows, lanes), x2d.dtype),
        grid=grid,
        in_specs=[pl.BlockSpec((block_rows, lanes), lambda i: (i, 0))],
        out_specs=pl.BlockSpec((block_rows, lanes), lambda i: (i, 0)),
        compiler_params=pltpu.CompilerParams(
            dimension_semantics=("parallel",),
        ),
    )(x2d)


def _net_forward_impl(x: jax.Array) -> jax.Array:
    """Pallas equivalent of Net.forward (empty forward -> identity copy)."""
    orig_shape = x.shape
    n = math.prod(orig_shape) if orig_shape else 1
    flat = x.reshape(-1)

    if n % (_LANE * _SUBLANE) == 0:
        # Fast path (no pad, no slice): lane-dense (rows, 128) slab.
        rows = n // _LANE
        y2d = _identity_pallas_2d(flat.reshape(rows, _LANE))
        return y2d.reshape(orig_shape)

    # Rare unaligned-size path: one pad pass in, one slice out.
    rows = pl.cdiv(n, _LANE)
    rows = pl.cdiv(rows, _SUBLANE) * _SUBLANE
    padded = rows * _LANE
    flat = jnp.pad(flat, (0, padded - n))
    y2d = _identity_pallas_2d(flat.reshape(rows, _LANE))
    return y2d.reshape(-1)[:n].reshape(orig_shape)


net_forward = jax.jit(_net_forward_impl)


if __name__ == "__main__":
    key = jax.random.PRNGKey(0)
    # Small NCHW input consistent with a conv-net style module.
    x = jax.random.normal(key, (2, 4, 16, 16), dtype=jnp.float32)
    x_expected = np.asarray(x)

    y = net_forward(x)
    jax.block_until_ready(y)

    # Sanity check: identity semantics.
    assert y.shape == x.shape and y.dtype == x.dtype
    assert np.allclose(np.asarray(y), x_expected)

    print("KERNEL_OK")
</pallas_src>

<mosaic_0001>
module attributes {stable_mosaic.version = 11 : i64} {
  func.func @_copy_kernel(%arg0: i32, %arg1: memref<16x128xf32, #tpu.memory_space<vmem>>, %arg2: memref<16x128xf32, #tpu.memory_space<vmem>>) attributes {dimension_semantics = [#tpu.dimension_semantics<parallel>], iteration_bounds = array<i64: 1>, scalar_prefetch = 0 : i64, scratch_operands = 0 : i64, tpu.core_type = #tpu.core_type<tc>, window_params = [{transform_indices = @transform_0, window_bounds = array<i64: 16, 128>}, {transform_indices = @transform_1, window_bounds = array<i64: 16, 128>}]} {
    %c0 = arith.constant 0 : index
    %c0_0 = arith.constant 0 : index
    %0 = vector.load %arg1[%c0, %c0_0] : memref<16x128xf32, #tpu.memory_space<vmem>>, vector<16x128xf32>
    %c0_1 = arith.constant 0 : index
    %c0_2 = arith.constant 0 : index
    %1 = vector.load %arg2[%c0_1, %c0_2] : memref<16x128xf32, #tpu.memory_space<vmem>>, vector<16x128xf32>
    tpu.vector_store %arg2[%c0_1, %c0_2], %0 {strides = array<i32>} : memref<16x128xf32, #tpu.memory_space<vmem>>, vector<16x128xf32>,
    return
  }
  func.func @transform_0(%arg0: i32) -> (i32, i32) {
    %c0_i32 = arith.constant 0 : i32
    %c0_i32_0 = arith.constant 0 : i32
    return %arg0, %c0_i32 : i32, i32
  }
  func.func @transform_1(%arg0: i32) -> (i32, i32) {
    %c0_i32 = arith.constant 0 : i32
    %c0_i32_0 = arith.constant 0 : i32
    return %arg0, %c0_i32 : i32, i32
  }
}

</mosaic_0001>

<bundles_post_ra>
// kernel: _net_forward_impl.1
= control target key start
LH: loop header
LB: loop body
LE: loop exit
PB: predicated region body
PF: predicated region fallthrough
CT: control target
= control target key end

     0   :  { %s38_s0 = inlined_call_operand.vmem [shape: f32[16,128], index: 0, kind: input, shape index: {}]   ;;  %s39_s1 = inlined_call_operand.vmem [shape: f32[16,128], index: 1, kind: output, shape index: {}]  }
   0x1   :  { %v8_v0 = vld [vmem:[%s38_s0] sm:$0xff]  ;;  %v9_v1 = vld [vmem:[%s38_s0 + $0x8] sm:$0xff] }
   0x2   :  { %10 = vst [vmem:[%s39_s1] sm:$0xff] %v8_v0  ;;  %11 = vst [vmem:[%s39_s1 + $0x8] sm:$0xff] %v9_v1 }

</bundles_post_ra>
